<compile_context>
chip_gen: v7x
topology: tpu7x:2x2x1
jax: 0.10.0
libtpu: 0.0.40
codegen_flags: <defaults>
</compile_context>

<pallas_src>
import functools

import jax
import jax.numpy as jnp
from jax.experimental import pallas as pl
from jax.experimental.pallas import tpu as pltpu


# ----------------------------------------------------------------------------
# Small helpers.
# ----------------------------------------------------------------------------
def _round_up(x, m):
    return -(-x // m) * m


def _round_down_min(x, m):
    return max(m, (x // m) * m)


def _tpu_vmem_and_cores():
    """(VMEM bytes per TensorCore, #TensorCores).  v7x: 64 MiB / 2 cores,
    v5e/v6e: 128 MiB / 1 core.  Conservative defaults if the query fails."""
    vmem = 64 * 1024 * 1024
    try:
        vmem = int(pltpu.get_tpu_info().vmem_capacity_bytes)
    except Exception:
        pass
    cores = 2 if vmem <= 64 * 1024 * 1024 else 1
    return vmem, cores


def _vmem_budget(vmem_cap):
    # v5e/v6e (128 MiB physical): let streams use up to ~64 MiB.
    # v7x (64 MiB physical): keep streams + weights + intermediates < ~48 MiB.
    return 64 * 1024 * 1024 if vmem_cap >= 100 * 1024 * 1024 else 40 * 1024 * 1024


def _choose_group(num_blocks, block_size):
    """Group `g` adjacent blocks so the per-grid-cell channel window g*bs is a
    multiple of 128 lanes (no structural-zero waste beyond the group).  Tiny
    hidden sizes (C < 128) fall back to full dense fusion + a transposed
    (lane-major) layout so stores stay lane-dense."""
    C = num_blocks * block_size
    for g in range(1, num_blocks + 1):
        if num_blocks % g == 0 and (g * block_size) % 128 == 0:
            return g, False
    if C >= 128:
        return num_blocks, False      # dense fusion, full-C (>=128) blocks
    return num_blocks, True           # tiny C: transposed / lane-major layout


def _choose_tile_m(M, cw, hsf, out_bytes, resident_bytes, budget_bytes,
                   num_cores, lane_major):
    """M-tile sizing: double-buffered activation/output streams + in-kernel
    intermediates + resident weights must fit the per-generation budget."""
    hw = 2 * cw * hsf
    per_row = (2 * (2 * cw) * 4            # f32 real+imag inputs, double-buffered
               + 2 * (2 * cw) * out_bytes  # real+imag outputs, double-buffered
               + (2 * cw) * 2              # bf16 [re|im] concat
               + hw * (4 + 2)              # f32 hidden + bf16 copy for matmul 2
               + (2 * cw) * 4)             # f32 epilogue before the final cast
    avail = max(budget_bytes - resident_bytes, 128 * per_row)
    tile = avail // per_row
    if lane_major:
        align = 128                        # tile_m sits on lanes -> 128-dense
    else:
        align = 256 if tile >= 256 else (128 if tile >= 128 else 16)
        align = min(align, max(8, _round_up(M, 8)))
    tile = min(tile, _round_up(M, align))
    if num_cores > 1 and M > align:        # give every TensorCore work (v7x only)
        tile = min(tile, _round_up(_round_up(M, align) // num_cores, align))
    return _round_down_min(tile, align)


# ----------------------------------------------------------------------------
# Weight packing (tiny, trace-time work).
# ----------------------------------------------------------------------------
def _group_block_diag(w, g):
    """(nb, din, dout) -> (nb//g, g*din, g*dout), block-diagonal per group."""
    nb, din, dout = w.shape
    ng = nb // g
    w = w.reshape(ng, g, din, dout)
    eye = jnp.eye(g, dtype=w.dtype)
    return jnp.einsum("nbio,bc->nbico", w, eye).reshape(ng, g * din, g * dout)


def _fuse_complex_groups(wr, wi):
    """[[Wr, Wi], [-Wi, Wr]] per group: complex matmul on [re | im] rows."""
    top = jnp.concatenate([wr, wi], axis=2)
    bot = jnp.concatenate([-wi, wr], axis=2)
    return jnp.concatenate([top, bot], axis=1)


def _fuse_bias_groups(b, g):
    """(2, nb, d) -> (nb//g, 1, 2*g*d): per-group [real | imag] bias rows."""
    _, nb, d = b.shape
    ng = nb // g
    return jnp.concatenate([b[0].reshape(ng, g * d),
                            b[1].reshape(ng, g * d)], axis=1)[:, None, :]


# Weights / biases never change their block across the inner grid loop: keep
# them single-buffered (halves their VMEM footprint).  Graceful fallback if
# pipeline_mode is unavailable in the installed JAX.
try:
    _RESIDENT = dict(pipeline_mode=pl.Buffered(1))
except Exception:                                             # pragma: no cover
    _RESIDENT = {}


# ----------------------------------------------------------------------------
# Pallas kernels: fused complex 2-layer MLP + softshrink on a tile of M rows.
# ----------------------------------------------------------------------------
def _afno_mlp_kernel_wide(xr_ref, xi_ref, w1_ref, b1_ref, w2_ref, b2_ref,
                          or_ref, oi_ref, *, lam, cdt):
    """Channels-last layout (per-cell channel window >= 128 lanes)."""
    cw = or_ref.shape[1]
    # [re | im] concat + compute-dtype cast in VMEM (not in the XLA wrapper).
    x = jnp.concatenate([xr_ref[...], xi_ref[...]], axis=1).astype(cdt)
    h = jnp.dot(x, w1_ref[0], preferred_element_type=jnp.float32)
    h = jnp.maximum(h + b1_ref[0], 0.0)                       # bias + ReLU in f32
    o = jnp.dot(h.astype(cdt), w2_ref[0], preferred_element_type=jnp.float32)
    o = o + b2_ref[0]
    o = jnp.where(o > lam, o - lam, jnp.where(o < -lam, o + lam, 0.0))
    or_ref[...] = o[:, :cw].astype(or_ref.dtype)
    oi_ref[...] = o[:, cw:].astype(oi_ref.dtype)


def _afno_mlp_kernel_tall(xr_ref, xi_ref, w1t_ref, b1_ref, w2t_ref, b2_ref,
                          or_ref, oi_ref, *, lam, cdt):
    """Transposed (lane-major) layout for tiny C: the M axis sits on lanes, so
    every store is an unmasked 128-lane-dense `vst`."""
    c = or_ref.shape[0]
    x = jnp.concatenate([xr_ref[...], xi_ref[...]], axis=1).astype(cdt)  # (tm,2C)
    # h = W1f^T @ x^T, written as a dot_general so the operand transpose is
    # absorbed by the MXU path instead of an extra relayout.
    h = jax.lax.dot_general(w1t_ref[...], x, (((1,), (1,)), ((), ())),
                            preferred_element_type=jnp.float32)          # (hw,tm)
    h = jnp.maximum(h + b1_ref[...], 0.0)
    o = jnp.dot(w2t_ref[...], h.astype(cdt),
                preferred_element_type=jnp.float32)                      # (2C,tm)
    o = o + b2_ref[...]
    o = jnp.where(o > lam, o - lam, jnp.where(o < -lam, o + lam, 0.0))
    or_ref[...] = o[:c, :].astype(or_ref.dtype)
    oi_ref[...] = o[c:, :].astype(oi_ref.dtype)


# ----------------------------------------------------------------------------
# MLP wrapper: packing, tiling and the pallas_call.
# ----------------------------------------------------------------------------
def afno_mlp(xr, xi, w1, b1, w2, b2, *, lam, compute_dtype=jnp.bfloat16):
    """xr, xi: (M, C) f32 real/imag parts of the kept rfft2 modes.
    Returns (o_real, o_imag), each (M, C); bf16 on the bf16 fast path (halves
    HBM writeback), f32 on the exact-check path."""
    M, C = xr.shape
    nb, bs, bsf = w1.shape[1], w1.shape[2], w1.shape[3]
    hsf = bsf // bs

    g, lane_major = _choose_group(nb, bs)
    ng = nb // g
    cw = g * bs               # channel window per grid cell
    hw = 2 * g * bsf          # fused hidden width per grid cell ([re | im])

    cdt = jnp.bfloat16 if compute_dtype == jnp.bfloat16 else jnp.float32
    odt = jnp.bfloat16 if cdt == jnp.bfloat16 else jnp.float32
    wbytes = jnp.dtype(cdt).itemsize
    obytes = jnp.dtype(odt).itemsize

    # Complex-fused, per-group block-diagonal weights and [re|im] bias rows.
    w1g = _fuse_complex_groups(_group_block_diag(w1[0], g),
                               _group_block_diag(w1[1], g)).astype(cdt)  # (ng,2cw,hw)
    w2g = _fuse_complex_groups(_group_block_diag(w2[0], g),
                               _group_block_diag(w2[1], g)).astype(cdt)  # (ng,hw,2cw)
    b1g = _fuse_bias_groups(b1, g).astype(jnp.float32)                   # (ng,1,hw)
    b2g = _fuse_bias_groups(b2, g).astype(jnp.float32)                   # (ng,1,2cw)

    vmem_cap, cores = _tpu_vmem_and_cores()
    budget = _vmem_budget(vmem_cap)
    resident = (2 * (2 * cw) * hw * wbytes      # one group's W1 + W2 (Buffered(1))
                + (hw + 2 * cw) * 4             # bias rows
                + (1 << 20))                    # slack
    tile_m = _choose_tile_m(M, cw, hsf, obytes, resident, budget, cores,
                            lane_major)
    n_tiles = pl.cdiv(M, tile_m)
    mp = n_tiles * tile_m
    vmem_limit = int(min(budget + resident + (4 << 20), 0.9 * vmem_cap))

    # Keep blocks divisible when the copy is negligible; at realistic M we rely
    # on Pallas' ragged last block (padded reads) instead of an O(M) jnp.pad.
    if mp != M and 2 * M * C * 4 < (16 << 20):
        xr = jnp.pad(xr, ((0, mp - M), (0, 0)))
        xi = jnp.pad(xi, ((0, mp - M), (0, 0)))

    if lane_major:
        # Tiny C: transposed layout -> lane-dense (C, tile_m) output stores.
        w1t = jnp.transpose(w1g[0])             # (hw, 2C)
        w2t = jnp.transpose(w2g[0])             # (2C, hw)
        b1c = b1g[0, 0][:, None]                # (hw, 1)
        b2c = b2g[0, 0][:, None]                # (2C, 1)
        kernel = functools.partial(_afno_mlp_kernel_tall, lam=lam, cdt=cdt)
        o_rt, o_it = pl.pallas_call(
            kernel,
            grid=(n_tiles,),
            in_specs=[
                pl.BlockSpec((tile_m, C), lambda i: (i, 0)),
                pl.BlockSpec((tile_m, C), lambda i: (i, 0)),
                pl.BlockSpec((hw, 2 * C), lambda i: (0, 0), **_RESIDENT),
                pl.BlockSpec((hw, 1), lambda i: (0, 0), **_RESIDENT),
                pl.BlockSpec((2 * C, hw), lambda i: (0, 0), **_RESIDENT),
                pl.BlockSpec((2 * C, 1), lambda i: (0, 0), **_RESIDENT),
            ],
            out_specs=(
                pl.BlockSpec((C, tile_m), lambda i: (0, i)),
                pl.BlockSpec((C, tile_m), lambda i: (0, i)),
            ),
            out_shape=(jax.ShapeDtypeStruct((C, mp), odt),
                       jax.ShapeDtypeStruct((C, mp), odt)),
            compiler_params=pltpu.CompilerParams(
                dimension_semantics=("parallel",),
                vmem_limit_bytes=vmem_limit),
        )(xr, xi, w1t, b1c, w2t, b2c)
        # Back to (M, C) for the irfft: pure layout plumbing (tiny-C path only).
        return o_rt[:, :M].T, o_it[:, :M].T

    kernel = functools.partial(_afno_mlp_kernel_wide, lam=lam, cdt=cdt)
    o_r, o_i = pl.pallas_call(
        kernel,
        grid=(ng, n_tiles),                     # inner M loop keeps the group's
        in_specs=[                              # weights resident
            pl.BlockSpec((tile_m, cw), lambda j, i: (i, j)),
            pl.BlockSpec((tile_m, cw), lambda j, i: (i, j)),
            pl.BlockSpec((1, 2 * cw, hw), lambda j, i: (j, 0, 0), **_RESIDENT),
            pl.BlockSpec((1, 1, hw), lambda j, i: (j, 0, 0), **_RESIDENT),
            pl.BlockSpec((1, hw, 2 * cw), lambda j, i: (j, 0, 0), **_RESIDENT),
            pl.BlockSpec((1, 1, 2 * cw), lambda j, i: (j, 0, 0), **_RESIDENT),
        ],
        out_specs=(
            pl.BlockSpec((tile_m, cw), lambda j, i: (i, j)),
            pl.BlockSpec((tile_m, cw), lambda j, i: (i, j)),
        ),
        out_shape=(jax.ShapeDtypeStruct((mp, C), odt),
                   jax.ShapeDtypeStruct((mp, C), odt)),
        compiler_params=pltpu.CompilerParams(
            dimension_semantics=("parallel", "parallel"),
            vmem_limit_bytes=vmem_limit),
    )(xr, xi, w1g, b1g, w2g, b2g)
    return o_r[:M], o_i[:M]


# ----------------------------------------------------------------------------
# Full AFNO2D forward.
# ----------------------------------------------------------------------------
def afno2d_forward(x, params, *, num_blocks, sparsity_threshold=0.01,
                   hard_thresholding_fraction=1.0, hidden_size_factor=1,
                   compute_dtype=jnp.bfloat16):
    """x: (B, H, W, C) -> (B, H, W, C), matching AFNO2D.forward."""
    del num_blocks, hidden_size_factor        # carried by the parameter shapes
    w1, b1, w2, b2 = params["w1"], params["b1"], params["w2"], params["b2"]
    bias = x
    out_dtype = x.dtype
    x = x.astype(jnp.float32)
    B, H, W, C = x.shape
    Wf = W // 2 + 1

    # TODO(synk): rfft2 / irfft2 have no Pallas primitive; they stay in plain JAX.
    xf = jnp.fft.rfft2(x, axes=(1, 2), norm="ortho")         # (B, H, Wf, C) c64

    total_modes = H // 2 + 1
    kept = int(total_modes * hard_thresholding_fraction)
    if kept <= 0:                                             # everything zeroed
        return bias
    row_lo = max(total_modes - kept, 0)
    row_hi = min(total_modes + kept, H)
    col_hi = min(kept, Wf)
    full = (row_lo == 0) and (row_hi == H) and (col_hi == Wf)

    # Only the kept modes go through the kernel (everything else is exactly
    # zero after softshrink in the reference).  This also covers the
    # fraction==1, W > H corner where high-frequency columns must be dropped.
    xs = xf if full else xf[:, row_lo:row_hi, :col_hi, :]
    rows = H if full else row_hi - row_lo
    cols = Wf if full else col_hi
    Ms = B * rows * cols

    xr = jnp.real(xs).reshape(Ms, C)
    xi = jnp.imag(xs).reshape(Ms, C)

    o_r, o_i = afno_mlp(xr, xi, w1, b1, w2, b2, lam=sparsity_threshold,
                        compute_dtype=compute_dtype)

    o_blk = jax.lax.complex(o_r.astype(jnp.float32),
                            o_i.astype(jnp.float32)).reshape(B, rows, cols, C)
    if full:
        o_c = o_blk
    else:
        o_c = jnp.zeros((B, H, Wf, C), jnp.complex64)
        o_c = o_c.at[:, row_lo:row_hi, :col_hi, :].set(o_blk)

    y = jnp.fft.irfft2(o_c, s=(H, W), axes=(1, 2), norm="ortho")
    return y.astype(out_dtype) + bias


# ----------------------------------------------------------------------------
# Pure-JAX reference (mirrors the PyTorch module) for the correctness check.
# ----------------------------------------------------------------------------
def afno2d_reference(x, params, *, num_blocks, sparsity_threshold=0.01,
                     hard_thresholding_fraction=1.0, hidden_size_factor=1):
    w1, b1, w2, b2 = params["w1"], params["b1"], params["w2"], params["b2"]
    bias = x
    x = x.astype(jnp.float32)
    B, H, W, C = x.shape
    bs = C // num_blocks
    Wf = W // 2 + 1
    xf = jnp.fft.rfft2(x, axes=(1, 2), norm="ortho").reshape(B, H, Wf, num_blocks, bs)

    total_modes = H // 2 + 1
    kept = int(total_modes * hard_thresholding_fraction)
    lo, hi = total_modes - kept, total_modes + kept

    o1r = jnp.zeros((B, H, Wf, num_blocks, bs * hidden_size_factor), jnp.float32)
    o1i = jnp.zeros_like(o1r)
    o2r = jnp.zeros((B, H, Wf, num_blocks, bs), jnp.float32)
    o2i = jnp.zeros_like(o2r)

    xs = xf[:, lo:hi, :kept]
    e = lambda a, w: jnp.einsum("...bi,bio->...bo", a, w)
    r1 = jax.nn.relu(e(xs.real, w1[0]) - e(xs.imag, w1[1]) + b1[0])
    i1 = jax.nn.relu(e(xs.imag, w1[0]) + e(xs.real, w1[1]) + b1[1])
    o1r = o1r.at[:, lo:hi, :kept].set(r1)
    o1i = o1i.at[:, lo:hi, :kept].set(i1)
    r2 = e(o1r[:, lo:hi, :kept], w2[0]) - e(o1i[:, lo:hi, :kept], w2[1]) + b2[0]
    i2 = e(o1i[:, lo:hi, :kept], w2[0]) + e(o1r[:, lo:hi, :kept], w2[1]) + b2[1]
    o2r = o2r.at[:, lo:hi, :kept].set(r2)
    o2i = o2i.at[:, lo:hi, :kept].set(i2)

    lam = sparsity_threshold
    ss = lambda v: jnp.where(v > lam, v - lam, jnp.where(v < -lam, v + lam, 0.0))
    xc = jax.lax.complex(ss(o2r), ss(o2i)).reshape(B, H, Wf, C)
    y = jnp.fft.irfft2(xc, s=(H, W), axes=(1, 2), norm="ortho").astype(bias.dtype)
    return y + bias


# ----------------------------------------------------------------------------
if __name__ == "__main__":
    key = jax.random.PRNGKey(0)

    def make_params(k, nb, bs, hsf, scale=0.02):
        k1, k2, k3, k4 = jax.random.split(k, 4)
        return {
            "w1": scale * jax.random.normal(k1, (2, nb, bs, bs * hsf), jnp.float32),
            "b1": scale * jax.random.normal(k2, (2, nb, bs * hsf), jnp.float32),
            "w2": scale * jax.random.normal(k3, (2, nb, bs * hsf, bs), jnp.float32),
            "b2": scale * jax.random.normal(k4, (2, nb, bs), jnp.float32),
        }

    kx1, kp1, kx2, kp2 = jax.random.split(key, 4)

    # -- Config 1: tiny hidden size (C < 128) -> transposed lane-major path. --
    B, H, W, C = 2, 16, 16, 32
    nb, hsf = 8, 1
    x1 = jax.random.normal(kx1, (B, H, W, C), jnp.float32)
    p1 = make_params(kp1, nb, C // nb, hsf)
    common1 = dict(num_blocks=nb, sparsity_threshold=0.01,
                   hard_thresholding_fraction=1.0, hidden_size_factor=hsf)

    fwd1_bf16 = jax.jit(functools.partial(afno2d_forward,
                                          compute_dtype=jnp.bfloat16, **common1))
    fwd1_f32 = jax.jit(functools.partial(afno2d_forward,
                                         compute_dtype=jnp.float32, **common1))
    out1_bf16 = jax.block_until_ready(fwd1_bf16(x1, p1))
    out1_f32 = jax.block_until_ready(fwd1_f32(x1, p1))
    ref1 = jax.block_until_ready(afno2d_reference(x1, p1, **common1))

    assert out1_bf16.shape == (B, H, W, C)
    assert jnp.allclose(out1_f32, ref1, atol=2e-4, rtol=2e-4), \
        float(jnp.max(jnp.abs(out1_f32 - ref1)))
    assert jnp.allclose(out1_bf16, ref1, atol=5e-3, rtol=5e-3), \
        float(jnp.max(jnp.abs(out1_bf16 - ref1)))

    # -- Config 2: wide blocks (bs >= 128) + fraction < 1 -> grouped
    #    channels-last path with kept-mode pre-slicing. -----------------------
    B2, H2, W2, C2 = 1, 8, 8, 256
    nb2, hsf2 = 2, 2
    x2 = jax.random.normal(kx2, (B2, H2, W2, C2), jnp.float32)
    p2 = make_params(kp2, nb2, C2 // nb2, hsf2)
    common2 = dict(num_blocks=nb2, sparsity_threshold=0.01,
                   hard_thresholding_fraction=0.5, hidden_size_factor=hsf2)
    fwd2 = jax.jit(functools.partial(afno2d_forward,
                                     compute_dtype=jnp.float32, **common2))
    out2 = jax.block_until_ready(fwd2(x2, p2))
    ref2 = jax.block_until_ready(afno2d_reference(x2, p2, **common2))
    assert jnp.allclose(out2, ref2, atol=2e-4, rtol=2e-4), \
        float(jnp.max(jnp.abs(out2 - ref2)))

    print("KERNEL_OK")
</pallas_src>

<mosaic_0001>
module attributes {stable_mosaic.version = 11 : i64} {
  func.func @_afno_mlp_kernel_tall(%arg0: i32, %arg1: memref<256x32xf32, #tpu.memory_space<vmem>>, %arg2: memref<256x32xf32, #tpu.memory_space<vmem>>, %arg3: memref<64x64xbf16, #tpu.memory_space<vmem>>, %arg4: memref<64x1xf32, #tpu.memory_space<vmem>>, %arg5: memref<64x64xbf16, #tpu.memory_space<vmem>>, %arg6: memref<64x1xf32, #tpu.memory_space<vmem>>, %arg7: memref<32x256xbf16, #tpu.memory_space<vmem>>, %arg8: memref<32x256xbf16, #tpu.memory_space<vmem>>) attributes {dimension_semantics = [#tpu.dimension_semantics<parallel>], iteration_bounds = array<i64: 2>, scalar_prefetch = 0 : i64, scratch_operands = 0 : i64, tpu.core_type = #tpu.core_type<tc>, window_params = [{transform_indices = @transform_0, window_bounds = array<i64: 256, 32>}, {transform_indices = @transform_1, window_bounds = array<i64: 256, 32>}, {pipeline_mode = #tpu.pipeline_mode<synchronous>, transform_indices = @transform_2, window_bounds = array<i64: 64, 64>}, {pipeline_mode = #tpu.pipeline_mode<synchronous>, transform_indices = @transform_3, window_bounds = array<i64: 64, 1>}, {pipeline_mode = #tpu.pipeline_mode<synchronous>, transform_indices = @transform_4, window_bounds = array<i64: 64, 64>}, {pipeline_mode = #tpu.pipeline_mode<synchronous>, transform_indices = @transform_5, window_bounds = array<i64: 64, 1>}, {transform_indices = @transform_6, window_bounds = array<i64: 32, 256>}, {transform_indices = @transform_7, window_bounds = array<i64: 32, 256>}]} {
    %c0 = arith.constant 0 : index
    %c0_0 = arith.constant 0 : index
    %0 = vector.load %arg1[%c0, %c0_0] : memref<256x32xf32, #tpu.memory_space<vmem>>, vector<256x32xf32>
    %c0_1 = arith.constant 0 : index
    %c0_2 = arith.constant 0 : index
    %1 = vector.load %arg2[%c0_1, %c0_2] : memref<256x32xf32, #tpu.memory_space<vmem>>, vector<256x32xf32>
    %2 = tpu.concatenate %0, %1 in 1 : vector<256x32xf32>, vector<256x32xf32> -> vector<256x64xf32>
    %3 = arith.truncf %2 : vector<256x64xf32> to vector<256x64xbf16>
    %c0_3 = arith.constant 0 : index
    %c0_4 = arith.constant 0 : index
    %4 = vector.load %arg3[%c0_3, %c0_4] : memref<64x64xbf16, #tpu.memory_space<vmem>>, vector<64x64xbf16>
    %cst = arith.constant dense<0.000000e+00> : vector<64x256xf32>
    %5 = tpu.matmul %4, %3, %cst {dimension_numbers = #tpu.dot_dimension_numbers<[1], [1], [0], [0], [0, 0, 1, 0], [], []>} : vector<64x64xbf16>, vector<256x64xbf16>, vector<64x256xf32> -> vector<64x256xf32>
    %c0_5 = arith.constant 0 : index
    %c0_6 = arith.constant 0 : index
    %6 = vector.load %arg4[%c0_5, %c0_6] : memref<64x1xf32, #tpu.memory_space<vmem>>, vector<64x1xf32>
    %7 = vector.broadcast %6 : vector<64x1xf32> to vector<64x256xf32>
    %8 = arith.addf %5, %7 : vector<64x256xf32>
    %cst_7 = arith.constant 0.000000e+00 : f32
    %9 = vector.broadcast %cst_7 : f32 to vector<64x256xf32>
    %10 = arith.maximumf %8, %9 : vector<64x256xf32>
    %c0_8 = arith.constant 0 : index
    %c0_9 = arith.constant 0 : index
    %11 = vector.load %arg5[%c0_8, %c0_9] : memref<64x64xbf16, #tpu.memory_space<vmem>>, vector<64x64xbf16>
    %12 = arith.truncf %10 : vector<64x256xf32> to vector<64x256xbf16>
    %cst_10 = arith.constant dense<0.000000e+00> : vector<64x256xf32>
    %13 = tpu.matmul %11, %12, %cst_10 {dimension_numbers = #tpu.dot_dimension_numbers<[1], [0], [0], [1], [0, 0, 1, 1], [], []>} : vector<64x64xbf16>, vector<64x256xbf16>, vector<64x256xf32> -> vector<64x256xf32>
    %c0_11 = arith.constant 0 : index
    %c0_12 = arith.constant 0 : index
    %14 = vector.load %arg6[%c0_11, %c0_12] : memref<64x1xf32, #tpu.memory_space<vmem>>, vector<64x1xf32>
    %15 = vector.broadcast %14 : vector<64x1xf32> to vector<64x256xf32>
    %16 = arith.addf %13, %15 : vector<64x256xf32>
    %cst_13 = arith.constant 0.00999999977 : f32
    %17 = vector.broadcast %cst_13 : f32 to vector<64x256xf32>
    %18 = arith.cmpf ogt, %16, %17 : vector<64x256xf32>
    %cst_14 = arith.constant 0.00999999977 : f32
    %19 = vector.broadcast %cst_14 : f32 to vector<64x256xf32>
    %20 = arith.subf %16, %19 : vector<64x256xf32>
    %cst_15 = arith.constant -0.00999999977 : f32
    %21 = vector.broadcast %cst_15 : f32 to vector<64x256xf32>
    %22 = arith.cmpf olt, %16, %21 : vector<64x256xf32>
    %cst_16 = arith.constant 0.00999999977 : f32
    %23 = vector.broadcast %cst_16 : f32 to vector<64x256xf32>
    %24 = arith.addf %16, %23 : vector<64x256xf32>
    %cst_17 = arith.constant 0.000000e+00 : f32
    %25 = vector.broadcast %cst_17 : f32 to vector<64x256xf32>
    %26 = arith.select %22, %24, %25 : vector<64x256xi1>, vector<64x256xf32>
    %27 = arith.select %18, %20, %26 : vector<64x256xi1>, vector<64x256xf32>
    %28 = vector.extract_strided_slice %27 {offsets = [0, 0], sizes = [32, 256], strides = [1, 1]} : vector<64x256xf32> to vector<32x256xf32>
    %29 = arith.truncf %28 : vector<32x256xf32> to vector<32x256xbf16>
    %c0_18 = arith.constant 0 : index
    %c0_19 = arith.constant 0 : index
    %30 = vector.load %arg7[%c0_18, %c0_19] : memref<32x256xbf16, #tpu.memory_space<vmem>>, vector<32x256xbf16>
    tpu.vector_store %arg7[%c0_18, %c0_19], %29 {strides = array<i32>} : memref<32x256xbf16, #tpu.memory_space<vmem>>, vector<32x256xbf16>,
    %31 = vector.extract_strided_slice %27 {offsets = [32, 0], sizes = [32, 256], strides = [1, 1]} : vector<64x256xf32> to vector<32x256xf32>
    %32 = arith.truncf %31 : vector<32x256xf32> to vector<32x256xbf16>
    %c0_20 = arith.constant 0 : index
    %c0_21 = arith.constant 0 : index
    %33 = vector.load %arg8[%c0_20, %c0_21] : memref<32x256xbf16, #tpu.memory_space<vmem>>, vector<32x256xbf16>
    tpu.vector_store %arg8[%c0_20, %c0_21], %32 {strides = array<i32>} : memref<32x256xbf16, #tpu.memory_space<vmem>>, vector<32x256xbf16>,
    return
  }
  func.func @transform_0(%arg0: i32) -> (i32, i32) {
    %c0_i32 = arith.constant 0 : i32
    %c0_i32_0 = arith.constant 0 : i32
    return %arg0, %c0_i32 : i32, i32
  }
  func.func @transform_1(%arg0: i32) -> (i32, i32) {
    %c0_i32 = arith.constant 0 : i32
    %c0_i32_0 = arith.constant 0 : i32
    return %arg0, %c0_i32 : i32, i32
  }
  func.func @transform_2(%arg0: i32) -> (i32, i32) {
    %c0_i32 = arith.constant 0 : i32
    %c0_i32_0 = arith.constant 0 : i32
    %c0_i32_1 = arith.constant 0 : i32
    return %c0_i32, %c0_i32_0 : i32, i32
  }
  func.func @transform_3(%arg0: i32) -> (i32, i32) {
    %c0_i32 = arith.constant 0 : i32
    %c0_i32_0 = arith.constant 0 : i32
    %c0_i32_1 = arith.constant 0 : i32
    return %c0_i32, %c0_i32_0 : i32, i32
  }
  func.func @transform_4(%arg0: i32) -> (i32, i32) {
    %c0_i32 = arith.constant 0 : i32
    %c0_i32_0 = arith.constant 0 : i32
    %c0_i32_1 = arith.constant 0 : i32
    return %c0_i32, %c0_i32_0 : i32, i32
  }
  func.func @transform_5(%arg0: i32) -> (i32, i32) {
    %c0_i32 = arith.constant 0 : i32
    %c0_i32_0 = arith.constant 0 : i32
    %c0_i32_1 = arith.constant 0 : i32
    return %c0_i32, %c0_i32_0 : i32, i32
  }
  func.func @transform_6(%arg0: i32) -> (i32, i32) {
    %c0_i32 = arith.constant 0 : i32
    %c0_i32_0 = arith.constant 0 : i32
    return %c0_i32, %arg0 : i32, i32
  }
  func.func @transform_7(%arg0: i32) -> (i32, i32) {
    %c0_i32 = arith.constant 0 : i32
    %c0_i32_0 = arith.constant 0 : i32
    return %c0_i32, %arg0 : i32, i32
  }
}

</mosaic_0001>

<bundles_post_ra>
// kernel: squeeze.7
= control target key start
LH: loop header
LB: loop body
LE: loop exit
PB: predicated region body
PF: predicated region fallthrough
CT: control target
= control target key end

     0   :  { %s67_s10 = smov 28   ;;  %s68_s11 = smov 20   ;;  %vm3_vm0 = vcmask 31744   ;;  %vm9_vm1 = vcmask 261344   ;;  %vm15_vm2 = vcmask 228544   ;;  %vm21_vm3 = vcmask 195744   ;;  %s111_s0 = inlined_call_operand.vmem [shape: f32[1,8,4], index: 0, kind: input, shape index: {}]   ;;  %s112_s1 = inlined_call_operand.vmem [shape: f32[1,32], index: 1, kind: output, shape index: {}]  }
   0x1   :  { %v53_v0 = vld [vmem:[%s111_s0 + $0x7] sm:$0x1]   ;;  %v55_v1 = vld [vmem:[%s111_s0 + $0x5] sm:$0x1]   ;;  %v54_v2 = vld [vmem:[%s111_s0 + $0x6] sm:$0x1]  }
   0x2   :  { %7 = vrot.lane.b32.xlu0 %v53_v0, %s67_s10  ;;  %19 = vrot.lane.b32.xlu1 %v55_v1, %s68_s11  ;;  %v56_v3 = vld [vmem:[%s111_s0 + $0x4] sm:$0x1]   ;;  %v2_v4 = vld [vmem:[%s111_s0] sm:$0x1]   ;;  %s69_s18 = smov 24   ;;  %s70_s19 = smov 16  }
   0x3   :  { %4 = vst.msk [vmem:[#allocation0] sm:$0x1] %vm3_vm0, %v2_v4   ;;  %v57_v5 = vld [vmem:[%s111_s0 + $0x3] sm:$0x1]   ;;  %v58_v6 = vld [vmem:[%s111_s0 + $0x2] sm:$0x1]  }
   0x4   :  { %s71_s24 = smov 12   ;;  %s72_s25 = smov 8   ;;  %v59_v7 = vld [vmem:[%s111_s0 + $0x1] sm:$0x1]   ;;  %vm27_vm4 = vcmask 162944   ;;  %vm33_vm5 = vcmask 130144  }
   0x5   :  { %s73_s0 = smov 4   ;;  %vm39_vm6 = vcmask 97344   ;;  %vm45_vm7 = vcmask 64544  }
   0x6   :  { %13 = vrot.lane.b32.xlu0 %v54_v2, %s69_s18  ;;  %25 = vrot.lane.b32.xlu1 %v56_v3, %s70_s19 }
   0xa   :  { %31 = vrot.lane.b32.xlu0 %v57_v5, %s71_s24  ;;  %37 = vrot.lane.b32.xlu1 %v58_v6, %s72_s25 }
   0xe   :  { %43 = vrot.lane.b32.xlu0 %v59_v7, %s73_s0 }
  0x74   :  { %v8_v8 = vpop.permute.xlu0 %7   ;;  %v20_v9 = vpop.permute.xlu1 %19  }
  0x75   :  { %10 = vst.msk [vmem:[#allocation0] sm:$0x1] %vm9_vm1, %v8_v8  }
  0x78   :  { %v14_v10 = vpop.permute.xlu0 %13   ;;  %v26_v11 = vpop.permute.xlu1 %25  }
  0x79   :  { %16 = vst.msk [vmem:[#allocation0] sm:$0x1] %vm15_vm2, %v14_v10  }
  0x7a   :  { %22 = vst.msk [vmem:[#allocation0] sm:$0x1] %vm21_vm3, %v20_v9  }
  0x7b   :  { %28 = vst.msk [vmem:[#allocation0] sm:$0x1] %vm27_vm4, %v26_v11  }
  0x7c   :  { %v32_v12 = vpop.permute.xlu0 %31   ;;  %v38_v13 = vpop.permute.xlu1 %37  }
  0x7d   :  { %34 = vst.msk [vmem:[#allocation0] sm:$0x1] %vm33_vm5, %v32_v12  }
  0x7e   :  { %40 = vst.msk [vmem:[#allocation0] sm:$0x1] %vm39_vm6, %v38_v13  }
  0x80   :  { %v44_v14 = vpop.permute.xlu0 %43  }
  0x81   :  { %46 = vst.msk [vmem:[#allocation0] sm:$0x1] %vm45_vm7, %v44_v14  }
  0x88   :  { %v50_v15 = vld [vmem:[#allocation0] sm:$0x1] }
  0x89   :  { %52 = vst [vmem:[%s112_s1] sm:$0x1] %v50_v15 }

// kernel: reverse.1
= control target key start
LH: loop header
LB: loop body
LE: loop exit
PB: predicated region body
PF: predicated region fallthrough
CT: control target
= control target key end

     0   :  { %s344_s0 = inlined_call_operand.vmem [shape: f32[2,32,16,7], index: 0, kind: input, shape index: {}]   ;;  %s345_s1 = inlined_call_operand.vmem [shape: f32[2,32,16,7], index: 1, kind: output, shape index: {}]  }
   0x1   :  { %v112_v0 = vld [vmem:[%s344_s0 + $0x60] sm:$0xff]  ;;  %v113_v1 = vld [vmem:[%s344_s0 + $0xd0] sm:$0xff]  ;;  %v138_v14 = vld [vmem:[%s344_s0 + $0x68] sm:$0xff] }
   0x2   :  { %v115_v2 = vld [vmem:[%s344_s0 + $0x50] sm:$0xff]  ;;  %4 = vst [vmem:[%s345_s1] sm:$0xff] %v112_v0  ;;  %114 = vst [vmem:[%s345_s1 + $0x70] sm:$0xff] %v113_v1  ;;  %v117_v3 = vld [vmem:[%s344_s0 + $0xc0] sm:$0xff] }
   0x3   :  { %116 = vst [vmem:[%s345_s1 + $0x10] sm:$0xff] %v115_v2  ;;  %v119_v4 = vld [vmem:[%s344_s0 + $0x40] sm:$0xff]  ;;  %v121_v5 = vld [vmem:[%s344_s0 + $0xb0] sm:$0xff]  ;;  %118 = vst [vmem:[%s345_s1 + $0x80] sm:$0xff] %v117_v3 }
   0x4   :  { %120 = vst [vmem:[%s345_s1 + $0x20] sm:$0xff] %v119_v4  ;;  %122 = vst [vmem:[%s345_s1 + $0x90] sm:$0xff] %v121_v5  ;;  %v123_v6 = vld [vmem:[%s344_s0 + $0x30] sm:$0xff]  ;;  %v125_v7 = vld [vmem:[%s344_s0 + $0xa0] sm:$0xff] }
   0x5   :  { %v127_v8 = vld [vmem:[%s344_s0 + $0x20] sm:$0xff]  ;;  %124 = vst [vmem:[%s345_s1 + $0x30] sm:$0xff] %v123_v6  ;;  %126 = vst [vmem:[%s345_s1 + $0xa0] sm:$0xff] %v125_v7  ;;  %v129_v9 = vld [vmem:[%s344_s0 + $0x90] sm:$0xff] }
   0x6   :  { %128 = vst [vmem:[%s345_s1 + $0x40] sm:$0xff] %v127_v8  ;;  %v131_v10 = vld [vmem:[%s344_s0 + $0x10] sm:$0xff]  ;;  %v133_v11 = vld [vmem:[%s344_s0 + $0x80] sm:$0xff]  ;;  %130 = vst [vmem:[%s345_s1 + $0xb0] sm:$0xff] %v129_v9 }
   0x7   :  { %132 = vst [vmem:[%s345_s1 + $0x50] sm:$0xff] %v131_v10  ;;  %134 = vst [vmem:[%s345_s1 + $0xc0] sm:$0xff] %v133_v11  ;;  %v49_v12 = vld [vmem:[%s344_s0] sm:$0xff]  ;;  %v136_v13 = vld [vmem:[%s344_s0 + $0x70] sm:$0xff] }
   0x8   :  { %135 = vst [vmem:[%s345_s1 + $0x60] sm:$0xff] %v49_v12  ;;  %137 = vst [vmem:[%s345_s1 + $0xd0] sm:$0xff] %v136_v13  ;;  %v140_v15 = vld [vmem:[%s344_s0 + $0xd8] sm:$0xff]  ;;  %v144_v17 = vld [vmem:[%s344_s0 + $0xc8] sm:$0xff] }
   0x9   :  { %139 = vst [vmem:[%s345_s1 + $0x8] sm:$0xff] %v138_v14  ;;  %v142_v16 = vld [vmem:[%s344_s0 + $0x58] sm:$0xff]  ;;  %141 = vst [vmem:[%s345_s1 + $0x78] sm:$0xff] %v140_v15  ;;  %v146_v18 = vld [vmem:[%s344_s0 + $0x48] sm:$0xff] }
   0xa   :  { %143 = vst [vmem:[%s345_s1 + $0x18] sm:$0xff] %v142_v16  ;;  %145 = vst [vmem:[%s345_s1 + $0x88] sm:$0xff] %v144_v17  ;;  %v148_v19 = vld [vmem:[%s344_s0 + $0xb8] sm:$0xff]  ;;  %v152_v21 = vld [vmem:[%s344_s0 + $0xa8] sm:$0xff] }
   0xb   :  { %v150_v20 = vld [vmem:[%s344_s0 + $0x38] sm:$0xff]  ;;  %147 = vst [vmem:[%s345_s1 + $0x28] sm:$0xff] %v146_v18  ;;  %149 = vst [vmem:[%s345_s1 + $0x98] sm:$0xff] %v148_v19  ;;  %v154_v22 = vld [vmem:[%s344_s0 + $0x28] sm:$0xff] }
   0xc   :  { %151 = vst [vmem:[%s345_s1 + $0x38] sm:$0xff] %v150_v20  ;;  %v156_v23 = vld [vmem:[%s344_s0 + $0x98] sm:$0xff]  ;;  %153 = vst [vmem:[%s345_s1 + $0xa8] sm:$0xff] %v152_v21  ;;  %v160_v25 = vld [vmem:[%s344_s0 + $0x88] sm:$0xff] }
   0xd   :  { %155 = vst [vmem:[%s345_s1 + $0x48] sm:$0xff] %v154_v22  ;;  %157 = vst [vmem:[%s345_s1 + $0xb8] sm:$0xff] %v156_v23  ;;  %v158_v24 = vld [vmem:[%s344_s0 + $0x18] sm:$0xff]  ;;  %v162_v26 = vld [vmem:[%s344_s0 + $0x8] sm:$0xff] }
   0xe   :  { %159 = vst [vmem:[%s345_s1 + $0x58] sm:$0xff] %v158_v24  ;;  %161 = vst [vmem:[%s345_s1 + $0xc8] sm:$0xff] %v160_v25  ;;  %v164_v27 = vld [vmem:[%s344_s0 + $0x78] sm:$0xff] }
   0xf   :  { %163 = vst [vmem:[%s345_s1 + $0x68] sm:$0xff] %v162_v26  ;;  %165 = vst [vmem:[%s345_s1 + $0xd8] sm:$0xff] %v164_v27 }

// kernel: afno2d_forward.1
= control target key start
LH: loop header
LB: loop body
LE: loop exit
PB: predicated region body
PF: predicated region fallthrough
CT: control target
= control target key end

     0   :  { %s1576_s24 = smov 0   ;;  %s1578_s25 = smov 0   ;;  %s1892_s0 = inlined_call_operand.vmem [shape: f32[512,32], index: 0, kind: input, shape index: {}]   ;;  %s1893_s1 = inlined_call_operand.vmem [shape: f32[512,32], index: 1, kind: input, shape index: {}]   ;;  %s1894_s2 = inlined_call_operand.vmem [shape: bf16[64,64], index: 2, kind: input, shape index: {}]   ;;  %s1895_s3 = inlined_call_operand.vmem [shape: f32[64,1], index: 3, kind: input, shape index: {}]   ;;  %s1896_s4 = inlined_call_operand.vmem [shape: bf16[64,64], index: 4, kind: input, shape index: {}]   ;;  %s1897_s5 = inlined_call_operand.vmem [shape: f32[64,1], index: 5, kind: input, shape index: {}]   ;;  %s1898_s6 = inlined_call_operand.vmem [shape: bf16[32,512], index: 6, kind: output, shape index: {0}]   ;;  %s1899_s7 = inlined_call_operand.vmem [shape: bf16[32,512], index: 7, kind: output, shape index: {1}]  }
   0x1   :  { %s1580_s26 = smov 0  }
   0x2 LB: > { %s1589_s27 = sadd.s32 4294967295, %s1532_s26   ;;  %s1591_s28 = sadd.s32 1, %s1532_s26   ;;  %s1532_s26 = sphi %s1580_s26, %s1903_s26   ;;  %s1528_s25 = sphi %s1578_s25, %s1902_s25   ;;  %s1524_s24 = sphi %s1576_s24, %s1901_s24  }
   0x3   : > { %s158_s29 = ssub.s32 %s1532_s26, %s1591_s28  ;;  %s161_s30 = sadd.s32 1, %s1528_s25 }
   0x4   : > { %p159_p0 = scmp.eq.s32.totalorder %s158_s29, 0  ;;  %p171_p1 = scmp.ne.s32.totalorder %s1528_s25, %s1524_s24 }
   0x5   : > { %p172_p2 = scmp.eq.s32.totalorder %s1589_s27, 1  ;;  %p1297_p3 = scmp.ge.s32.totalorder %s1532_s26, 1 }
   0x6   : > { %s1599_s8 = scalar_select %p159_p0, %s1528_s25, %s161_s30  }
   0x7   : > { %p1601_p4 = por %p172_p2, %p171_p1  ;;  %p252_p5 = scmp.lt.s32.totalorder %s1532_s26, 3 }
   0x9   : > { %p253_p6 = pnand %p1297_p3, %p252_p5 }
   0xa   : > { %s1300_s10 = sshll.u32 (!%p253_p6), %s1589_s27, 5  ;;  %s1534_s15 = smov (!%p253_p6), 32   ;;  %v1667_v48 = vld [vmem:[%s1894_s2] sm:$0xff] (!%p253_p6)   ;;  %vm624_vm0 = vcmask (!%p253_p6), 523264   ;;  %v557_v49 = vld [vmem:[%s1895_s3 + $0x8] sm:$0xff] (!%p253_p6)  ;;  %v1535_v51 = vmov (!%p253_p6), 0  }
   0xb   : > { %256 = sbr.rel (%p253_p6) target bundleno = 720 (0x2d0), region = 44  ;;  %p293_p7 = scmp.lt.s32.totalorder (!%p253_p6), %s1300_s10, 63  ;;  %1378 = vmatprep.mubr.msk.bf16.mxu0 (!%p253_p6), %vm624_vm0, %v1667_v48  ;;  %v556_v50 = vld [vmem:[%s1895_s3] sm:$0xff] (!%p253_p6)  ;;  %1501 = vset.pattern.permute.xlu1 (!%p253_p6), %v1535_v51  ;;  %v558_v52 = vld [vmem:[%s1895_s3 + $0x10] sm:$0xff] (!%p253_p6)  ;;  %v559_v53 = vld [vmem:[%s1895_s3 + $0x18] sm:$0xff] (!%p253_p6)  ;;  %vm499_vm1 = vcmask (!%p253_p6), 261120  }
   0xc   : > { %1500 = vset.pattern.permute.xlu0 (!%p253_p6), %v1535_v51  ;;  %902 = vmatprep.mubr.bf16.mxu1 (!%p253_p6), %v1535_v51  ;;  %v560_v54 = vld [vmem:[%s1895_s3 + $0x20] sm:$0xff] (!%p253_p6)  ;;  %v561_v55 = vld [vmem:[%s1895_s3 + $0x28] sm:$0xff] (!%p253_p6)  ;;  %v562_v56 = vld [vmem:[%s1895_s3 + $0x30] sm:$0xff] (!%p253_p6)  ;;  %s283_s20 = sand.u32 (!%p253_p6), 1, %s1524_s24  }
   0xd   : > { %v563_v57 = vld [vmem:[%s1895_s3 + $0x38] sm:$0xff] (!%p253_p6)  ;;  %v790_v58 = vld [vmem:[%s1897_s5] sm:$0xff] (!%p253_p6)  ;;  %v791_v59 = vld [vmem:[%s1897_s5 + $0x8] sm:$0xff] (!%p253_p6)  ;;  %s1846_s21 = sshll.u32 (!%p253_p6), %s283_s20, 5 }
   0xe   : > { %v792_v60 = vld [vmem:[%s1897_s5 + $0x10] sm:$0xff] (!%p253_p6)  ;;  %v793_v61 = vld [vmem:[%s1897_s5 + $0x18] sm:$0xff] (!%p253_p6)  ;;  %v794_v62 = vld [vmem:[%s1897_s5 + $0x20] sm:$0xff] (!%p253_p6)  ;;  %s1849_s24 = scalar_lea.vmem (!%p253_p6), [#allocation2], %s1846_s21  ;;  %s1856_s22 = scalar_lea.vmem (!%p253_p6), [#allocation3], %s1846_s21 }
   0xf   : > { %v795_v63 = vld [vmem:[%s1897_s5 + $0x28] sm:$0xff] (!%p253_p6) }
  0x12   : > { %s1905_s10 = smov (!%p293_p7, %s1300_s10), 63 }
  0x13   : > { %s1301_s11 = sshll.u32 %s1905_s10, 3  ;;  %s1360_s10 = sshll.u32 (%p1601_p4), %s1589_s27, 3 }
  0x14   : > { %s1614_s14 = scalar_lea.vmem %s1893_s1, %s1301_s11  ;;  %s1721_s18 = scalar_lea.vmem %s1892_s0, %s1301_s11 }
  0x15   : > { %v339_v0 = vld [vmem:[%s1614_s14] sm:$0xff]  ;;  %v340_v1 = vld [vmem:[%s1614_s14 + $0x8] sm:$0xff]  ;;  %v341_v5 = vld [vmem:[%s1614_s14 + $0x10] sm:$0xff]  ;;  %s1108_s26 = scalar_lea.vmem (%p1601_p4), %s1898_s6, %s1360_s10 }
  0x16   : > { %v355_v2 = vld [vmem:[%s1614_s14 + $0x80] sm:$0xff]  ;;  %v1420_v3 = vpack.i.bf16 %v340_v1, %v339_v0  ;;  %v356_v4 = vld [vmem:[%s1614_s14 + $0x88] sm:$0xff]  ;;  %v342_v6 = vld [vmem:[%s1614_s14 + $0x18] sm:$0xff] }
  0x17   : > { %v1430_v7 = vpack.i.bf16 %v342_v6, %v341_v5  ;;  %v357_v8 = vld [vmem:[%s1614_s14 + $0x90] sm:$0xff]  ;;  %v358_v9 = vld [vmem:[%s1614_s14 + $0x98] sm:$0xff]  ;;  %v1425_v10 = vpack.i.bf16 %v356_v4, %v355_v2  ;;  %v343_v12 = vld [vmem:[%s1614_s14 + $0x20] sm:$0xff] }
  0x18   : > { %1421 = vrot.lane.b32.xlu0 %v1420_v3, %s1534_s15  ;;  %v1435_v11 = vpack.i.bf16 %v358_v9, %v357_v8  ;;  %v344_v13 = vld [vmem:[%s1614_s14 + $0x28] sm:$0xff]  ;;  %v359_v14 = vld [vmem:[%s1614_s14 + $0xa0] sm:$0xff]  ;;  %v345_v18 = vld [vmem:[%s1614_s14 + $0x30] sm:$0xff] }
  0x19   : > { %1431 = vrot.lane.b32.xlu1 %v1430_v7, %s1534_s15  ;;  %v360_v15 = vld [vmem:[%s1614_s14 + $0xa8] sm:$0xff]  ;;  %v1440_v16 = vpack.i.bf16 %v344_v13, %v343_v12  ;;  %v346_v19 = vld [vmem:[%s1614_s14 + $0x38] sm:$0xff]  ;;  %v361_v20 = vld [vmem:[%s1614_s14 + $0xb0] sm:$0xff] }
  0x1a   : > { %v1445_v17 = vpack.i.bf16 %v360_v15, %v359_v14  ;;  %v362_v21 = vld [vmem:[%s1614_s14 + $0xb8] sm:$0xff]  ;;  %v1450_v22 = vpack.i.bf16 %v346_v19, %v345_v18  ;;  %v347_v24 = vld [vmem:[%s1614_s14 + $0x40] sm:$0xff]  ;;  %v348_v25 = vld [vmem:[%s1614_s14 + $0x48] sm:$0xff] }
  0x1b   : > { %v1455_v23 = vpack.i.bf16 %v362_v21, %v361_v20  ;;  %v363_v26 = vld [vmem:[%s1614_s14 + $0xc0] sm:$0xff]  ;;  %v364_v27 = vld [vmem:[%s1614_s14 + $0xc8] sm:$0xff]  ;;  %v1460_v28 = vpack.i.bf16 %v348_v25, %v347_v24  ;;  %v349_v30 = vld [vmem:[%s1614_s14 + $0x50] sm:$0xff] }
  0x1c   : > { %1426 = vrot.lane.b32.xlu0 %v1425_v10, %s1534_s15  ;;  %v1465_v29 = vpack.i.bf16 %v364_v27, %v363_v26  ;;  %v350_v31 = vld [vmem:[%s1614_s14 + $0x58] sm:$0xff]  ;;  %v365_v32 = vld [vmem:[%s1614_s14 + $0xd0] sm:$0xff]  ;;  %v351_v36 = vld [vmem:[%s1614_s14 + $0x60] sm:$0xff] }
  0x1d   : > { %1436 = vrot.lane.b32.xlu1 %v1435_v11, %s1534_s15  ;;  %v366_v33 = vld [vmem:[%s1614_s14 + $0xd8] sm:$0xff]  ;;  %v1470_v34 = vpack.i.bf16 %v350_v31, %v349_v30  ;;  %v352_v37 = vld [vmem:[%s1614_s14 + $0x68] sm:$0xff]  ;;  %v367_v38 = vld [vmem:[%s1614_s14 + $0xe0] sm:$0xff] }
  0x1e   : > { %v1475_v35 = vpack.i.bf16 %v366_v33, %v365_v32  ;;  %v368_v39 = vld [vmem:[%s1614_s14 + $0xe8] sm:$0xff]  ;;  %v1480_v40 = vpack.i.bf16 %v352_v37, %v351_v36  ;;  %v353_v42 = vld [vmem:[%s1614_s14 + $0x70] sm:$0xff]  ;;  %v354_v43 = vld [vmem:[%s1614_s14 + $0x78] sm:$0xff] }
  0x1f   : > { %v1485_v41 = vpack.i.bf16 %v368_v39, %v367_v38  ;;  %v369_v44 = vld [vmem:[%s1614_s14 + $0xf0] sm:$0xff]  ;;  %v370_v45 = vld [vmem:[%s1614_s14 + $0xf8] sm:$0xff]  ;;  %v1490_v46 = vpack.i.bf16 %v354_v43, %v353_v42  ;;  %v307_v3 = vld [vmem:[%s1721_s18] sm:$0xff] }
  0x20   : > { %1441 = vrot.lane.b32.xlu0 %v1440_v16, %s1534_s15  ;;  %v1495_v47 = vpack.i.bf16 %v370_v45, %v369_v44  ;;  %v796_v0 = vld [vmem:[%s1897_s5 + $0x30] sm:$0xff]  ;;  %v797_v1 = vld [vmem:[%s1897_s5 + $0x38] sm:$0xff]  ;;  %v308_v4 = vld [vmem:[%s1721_s18 + $0x8] sm:$0xff] }
  0x21   : > { %1446 = vrot.lane.b32.xlu1 %v1445_v17, %s1534_s15  ;;  %v323_v11 = vld [vmem:[%s1721_s18 + $0x80] sm:$0xff]  ;;  %v324_v12 = vld [vmem:[%s1721_s18 + $0x88] sm:$0xff]  ;;  %v325_v16 = vld [vmem:[%s1721_s18 + $0x90] sm:$0xff] }
  0x22   : > { %v326_v17 = vld [vmem:[%s1721_s18 + $0x98] sm:$0xff]  ;;  %v328_v36 = vld [vmem:[%s1721_s18 + $0xa8] sm:$0xff]  ;;  %v311_v45 = vld [vmem:[%s1721_s18 + $0x20] sm:$0xff] }
  0x24   : > { %1451 = vrot.lane.b32.xlu0 %v1450_v22, %s1534_s15 }
  0x25   : > { %1456 = vrot.lane.b32.xlu1 %v1455_v23, %s1534_s15 }
  0x28   : > { %1461 = vrot.lane.b32.xlu0 %v1460_v28, %s1534_s15  ;;  %v309_v28 = vld [vmem:[%s1721_s18 + $0x10] sm:$0xff] }
  0x29   : > { %1466 = vrot.lane.b32.xlu1 %v1465_v29, %s1534_s15  ;;  %v310_v29 = vld [vmem:[%s1721_s18 + $0x18] sm:$0xff] }
  0x2c   : > { %1471 = vrot.lane.b32.xlu0 %v1470_v34, %s1534_s15 }
  0x2d   : > { %1476 = vrot.lane.b32.xlu1 %v1475_v35, %s1534_s15  ;;  %v327_v35 = vld [vmem:[%s1721_s18 + $0xa0] sm:$0xff] }
  0x30   : > { %1481 = vrot.lane.b32.xlu0 %v1480_v40, %s1534_s15 }
  0x31   : > { %1486 = vrot.lane.b32.xlu1 %v1485_v41, %s1534_s15 }
  0x34   : > { %1491 = vrot.lane.b32.xlu0 %v1490_v46, %s1534_s15  ;;  %v312_v46 = vld [vmem:[%s1721_s18 + $0x28] sm:$0xff] }
  0x35   : > { %1496 = vrot.lane.b32.xlu1 %v1495_v47, %s1534_s15 }
  0x38   : > { %566 = vperm.xlu0 %1500, %v556_v50  }
  0x39   : > { %571 = vperm.xlu1 %1501, %v557_v49  }
  0x3c   : > { %581 = vperm.xlu0 %1500, %v559_v53  }
  0x3d   : > { %576 = vperm.xlu1 %1501, %v558_v52  }
  0x40   : > { %591 = vperm.xlu0 %1500, %v561_v55  }
  0x41   : > { %586 = vperm.xlu1 %1501, %v560_v54  }
  0x44   : > { %601 = vperm.xlu0 %1500, %v563_v57   ;;  %v330_v57 = vld [vmem:[%s1721_s18 + $0xb8] sm:$0xff] }
  0x45   : > { %596 = vperm.xlu1 %1501, %v562_v56   ;;  %v329_v56 = vld [vmem:[%s1721_s18 + $0xb0] sm:$0xff] }
  0x48   : > { %805 = vperm.xlu0 %1500, %v791_v59  }
  0x49   : > { %800 = vperm.xlu1 %1501, %v790_v58  }
  0x4c   : > { %815 = vperm.xlu0 %1500, %v793_v61  }
  0x4d   : > { %810 = vperm.xlu1 %1501, %v792_v60  }
  0x50   : > { %825 = vperm.xlu0 %1500, %v795_v63  }
  0x51   : > { %820 = vperm.xlu1 %1501, %v794_v62  }
  0x54   : > { %835 = vperm.xlu0 %1500, %v797_v1   ;;  %v314_v1 = vld [vmem:[%s1721_s18 + $0x38] sm:$0xff] }
  0x55   : > { %830 = vperm.xlu1 %1501, %v796_v0   ;;  %v313_v0 = vld [vmem:[%s1721_s18 + $0x30] sm:$0xff] }
  0x8a   : > { %v1422_v2 = vpop.permute.xlu0 %1421 }
  0x8b   : > { %v1424_v5 = vunpack.i.h.bf16 %v1422_v2  ;;  %v1423_v6 = vunpack.i.l.bf16 %v1422_v2  ;;  %v1432_v7 = vpop.permute.xlu1 %1431 }
  0x8c   : > { %v1434_v21 = vunpack.i.h.bf16 %v1432_v7  ;;  %v1433_v22 = vunpack.i.l.bf16 %v1432_v7 }
  0x8d   : > { %v500_v8 = vsel %vm499_vm1, %v307_v3, %v1423_v6  ;;  %v501_v9 = vsel %vm499_vm1, %v308_v4, %v1424_v5 }
  0x8e   : > { %v1427_v10 = vpop.permute.xlu0 %1426  ;;  %v532_v18 = vpack.c.bf16 %v501_v9, %v500_v8  ;;  %v502_v38 = vsel %vm499_vm1, %v309_v28, %v1433_v22  ;;  %v503_v39 = vsel %vm499_vm1, %v310_v29, %v1434_v21  ;;  %v331_v9 = vld [vmem:[%s1721_s18 + $0xc0] sm:$0xff] }
  0x8f   : > { %v1429_v13 = vunpack.i.h.bf16 %v1427_v10  ;;  %v1428_v14 = vunpack.i.l.bf16 %v1427_v10  ;;  %v1437_v15 = vpop.permute.xlu1 %1436  ;;  %v533_v44 = vpack.c.bf16 %v503_v39, %v502_v38  ;;  %v332_v10 = vld [vmem:[%s1721_s18 + $0xc8] sm:$0xff] }
  0x90   : > { %v1439_v19 = vunpack.i.h.bf16 %v1437_v15  ;;  %v1438_v20 = vunpack.i.l.bf16 %v1437_v15  ;;  %v638_v32 = vsel %vm624_vm0, %v532_v18, 0  ;;  %v316_v18 = vld [vmem:[%s1721_s18 + $0x48] sm:$0xff] }
  0x91   : > { %v516_v23 = vsel %vm499_vm1, %v323_v11, %v1428_v14  ;;  %v517_v24 = vsel %vm499_vm1, %v324_v12, %v1429_v13  ;;  %v641_v55 = vsel %vm624_vm0, %v533_v44, 0  ;;  %v336_v44 = vld [vmem:[%s1721_s18 + $0xe8] sm:$0xff] }
  0x92   : > { %v540_v25 = vpack.c.bf16 %v517_v24, %v516_v23  ;;  %v518_v26 = vsel %vm499_vm1, %v325_v16, %v1438_v20  ;;  %v519_v27 = vsel %vm499_vm1, %v326_v17, %v1439_v19  ;;  %v1442_v37 = vpop.permute.xlu0 %1441  ;;  %v315_v17 = vld [vmem:[%s1721_s18 + $0x40] sm:$0xff] }
  0x93   : > { %v541_v30 = vpack.c.bf16 %v519_v27, %v518_v26  ;;  %v1447_v31 = vpop.permute.xlu1 %1446  ;;  %v1444_v42 = vunpack.i.h.bf16 %v1442_v37  ;;  %v1443_v43 = vunpack.i.l.bf16 %v1442_v37  ;;  %v333_v26 = vld [vmem:[%s1721_s18 + $0xd0] sm:$0xff]  ;;  %v334_v27 = vld [vmem:[%s1721_s18 + $0xd8] sm:$0xff] }
  0x94   : > { %1386 = vmatprep.subr.msk.bf16.mxu0 %vm624_vm0, %v540_v25  ;;  %v1449_v33 = vunpack.i.h.bf16 %v1447_v31  ;;  %v1448_v34 = vunpack.i.l.bf16 %v1447_v31 }
  0x95   : > { %1363 = vmatpush3.bf16.xpose.msra.mxu0 %v638_v32  ;;  %v504_v50 = vsel %vm499_vm1, %v311_v45, %v1443_v43  ;;  %v505_v52 = vsel %vm499_vm1, %v312_v46, %v1444_v42  ;;  %v335_v43 = vld [vmem:[%s1721_s18 + $0xe0] sm:$0xff] }
  0x96   : > { %1387 = vmatprep.subr.msk.bf16.mxu0 %vm624_vm0, %v541_v30  ;;  %v520_v40 = vsel %vm499_vm1, %v327_v35, %v1448_v34  ;;  %v521_v41 = vsel %vm499_vm1, %v328_v36, %v1449_v33  ;;  %v1452_v58 = vpop.permute.xlu0 %1451  ;;  %v534_v59 = vpack.c.bf16 %v505_v52, %v504_v50  ;;  %v317_v34 = vld [vmem:[%s1721_s18 + $0x50] sm:$0xff]  ;;  %v318_v35 = vld [vmem:[%s1721_s18 + $0x58] sm:$0xff] }
  0x97   : > { %v1457_v47 = vpop.permute.xlu1 %1456  ;;  %v542_v49 = vpack.c.bf16 %v521_v41, %v520_v40  ;;  %v1454_v62 = vunpack.i.h.bf16 %v1452_v58  ;;  %v1453_v63 = vunpack.i.l.bf16 %v1452_v58 }
  0x98   : > { %v1459_v53 = vunpack.i.h.bf16 %v1457_v47  ;;  %v1458_v54 = vunpack.i.l.bf16 %v1457_v47  ;;  %v644_v3 = vsel %vm624_vm0, %v534_v59, 0 }
  0x99   : > { %v506_v5 = vsel %vm499_vm1, %v313_v0, %v1453_v63  ;;  %v507_v6 = vsel %vm499_vm1, %v314_v1, %v1454_v62  ;;  %v337_v62 = vld [vmem:[%s1721_s18 + $0xf0] sm:$0xff]  ;;  %v338_v63 = vld [vmem:[%s1721_s18 + $0xf8] sm:$0xff] }
  0x9a   : > { %v522_v60 = vsel %vm499_vm1, %v329_v56, %v1458_v54  ;;  %v523_v61 = vsel %vm499_vm1, %v330_v57, %v1459_v53  ;;  %v1462_v11 = vpop.permute.xlu0 %1461  ;;  %v535_v12 = vpack.c.bf16 %v507_v6, %v506_v5  ;;  %v319_v53 = vld [vmem:[%s1721_s18 + $0x60] sm:$0xff]  ;;  %v320_v54 = vld [vmem:[%s1721_s18 + $0x68] sm:$0xff]  ;;  %v321_v6 = vld [vmem:[%s1721_s18 + $0x70] sm:$0xff] }
  0x9b   : > { %v1467_v2 = vpop.permute.xlu1 %1466  ;;  %v543_v4 = vpack.c.bf16 %v523_v61, %v522_v60  ;;  %v1464_v15 = vunpack.i.h.bf16 %v1462_v11  ;;  %v1463_v16 = vunpack.i.l.bf16 %v1462_v11 }
  0x9c   : > { %v1469_v7 = vunpack.i.h.bf16 %v1467_v2  ;;  %v1468_v8 = vunpack.i.l.bf16 %v1467_v2  ;;  %v647_v20 = vsel %vm624_vm0, %v535_v12, 0 }
  0x9d   : > { %1365 = vmatpush3.bf16.xpose.msra.mxu0 %v641_v55  ;;  %v508_v22 = vsel %vm499_vm1, %v315_v17, %v1463_v16  ;;  %v509_v23 = vsel %vm499_vm1, %v316_v18, %v1464_v15  ;;  %v1504_v15 = vld [vmem:[%s1894_s2 + $0x10] sm:$0xff]   ;;  %v1505_v16 = vld [vmem:[%s1894_s2 + $0x18] sm:$0xff]  }
  0x9e   : > { %1388 = vmatprep.subr.msk.bf16.mxu0 %vm624_vm0, %v542_v49  ;;  %v524_v13 = vsel %vm499_vm1, %v331_v9, %v1468_v8  ;;  %v525_v14 = vsel %vm499_vm1, %v332_v10, %v1469_v7  ;;  %v1472_v28 = vpop.permute.xlu0 %1471  ;;  %v536_v29 = vpack.c.bf16 %v509_v23, %v508_v22  ;;  %v322_v7 = vld [vmem:[%s1721_s18 + $0x78] sm:$0xff] }
  0x9f   : > { %v1477_v19 = vpop.permute.xlu1 %1476  ;;  %v544_v21 = vpack.c.bf16 %v525_v14, %v524_v13  ;;  %v1474_v32 = vunpack.i.h.bf16 %v1472_v28  ;;  %v1473_v33 = vunpack.i.l.bf16 %v1472_v28  ;;  %v1503_v14 = vld [vmem:[%s1894_s2 + $0x8] sm:$0xff]  }
  0xa0   : > { %v1479_v24 = vunpack.i.h.bf16 %v1477_v19  ;;  %v1478_v25 = vunpack.i.l.bf16 %v1477_v19  ;;  %v650_v37 = vsel %vm624_vm0, %v536_v29, 0 }
  0xa1   : > { %v510_v39 = vsel %vm499_vm1, %v317_v34, %v1473_v33  ;;  %v511_v40 = vsel %vm499_vm1, %v318_v35, %v1474_v32 }
  0xa2   : > { %v526_v30 = vsel %vm499_vm1, %v333_v26, %v1478_v25  ;;  %v527_v31 = vsel %vm499_vm1, %v334_v27, %v1479_v24  ;;  %v1482_v45 = vpop.permute.xlu0 %1481  ;;  %v537_v46 = vpack.c.bf16 %v511_v40, %v510_v39 }
  0xa3   : > { %v1487_v36 = vpop.permute.xlu1 %1486  ;;  %v545_v38 = vpack.c.bf16 %v527_v31, %v526_v30  ;;  %v1484_v50 = vunpack.i.h.bf16 %v1482_v45  ;;  %v1483_v52 = vunpack.i.l.bf16 %v1482_v45 }
  0xa4   : > { %v1489_v41 = vunpack.i.h.bf16 %v1487_v36  ;;  %v1488_v42 = vunpack.i.l.bf16 %v1487_v36  ;;  %v653_v56 = vsel %vm624_vm0, %v537_v46, 0 }
  0xa5   : > { %1367 = vmatpush3.bf16.xpose.msra.mxu0 %v644_v3  ;;  %v512_v58 = vsel %vm499_vm1, %v319_v53, %v1483_v52  ;;  %v513_v59 = vsel %vm499_vm1, %v320_v54, %v1484_v50 }
  0xa6   : > { %1389 = vmatprep.subr.msk.bf16.mxu0 %vm624_vm0, %v543_v4  ;;  %v528_v47 = vsel %vm499_vm1, %v335_v43, %v1488_v42  ;;  %v529_v49 = vsel %vm499_vm1, %v336_v44, %v1489_v41  ;;  %v1492_v0 = vpop.permute.xlu0 %1491  ;;  %v538_v1 = vpack.c.bf16 %v513_v59, %v512_v58 }
  0xa7   : > { %v1497_v55 = vpop.permute.xlu1 %1496  ;;  %v546_v57 = vpack.c.bf16 %v529_v49, %v528_v47  ;;  %v1494_v4 = vunpack.i.h.bf16 %v1492_v0  ;;  %v1493_v5 = vunpack.i.l.bf16 %v1492_v0 }
  0xa8   : > { %v1499_v60 = vunpack.i.h.bf16 %v1497_v55  ;;  %v1498_v61 = vunpack.i.l.bf16 %v1497_v55  ;;  %v656_v8 = vsel %vm624_vm0, %v538_v1, 0 }
  0xa9   : > { %v514_v10 = vsel %vm499_vm1, %v321_v6, %v1493_v5  ;;  %v515_v11 = vsel %vm499_vm1, %v322_v7, %v1494_v4 }
  0xaa   : > { %v530_v2 = vsel %vm499_vm1, %v337_v62, %v1498_v61  ;;  %v531_v3 = vsel %vm499_vm1, %v338_v63, %v1499_v60  ;;  %v539_v12 = vpack.c.bf16 %v515_v11, %v514_v10 }
  0xab   : > { %v547_v9 = vpack.c.bf16 %v531_v3, %v530_v2 }
  0xac   : > { %v659_v13 = vsel %vm624_vm0, %v539_v12, 0 }
  0xad   : > { %1369 = vmatpush3.bf16.xpose.msra.mxu0 %v647_v20 }
  0xae   : > { %1390 = vmatprep.subr.msk.bf16.mxu0 %vm624_vm0, %v544_v21 }
  0xb5   : > { %1371 = vmatpush3.bf16.xpose.msra.mxu0 %v650_v37 }
  0xb6   : > { %1391 = vmatprep.subr.msk.bf16.mxu0 %vm624_vm0, %v545_v38 }
  0xb8   : > { %v572_v20 = vpop.permute.xlu1 %571 }
  0xbc   : > { %v577_v31 = vpop.permute.xlu1 %576 }
  0xbd   : > { %1373 = vmatpush3.bf16.xpose.msra.mxu0 %v653_v56 }
  0xbe   : > { %1392 = vmatprep.subr.msk.bf16.mxu0 %vm624_vm0, %v546_v57 }
  0xc0   : > { %v587_v47 = vpop.permute.xlu1 %586 }
  0xc4   : > { %v597_v1 = vpop.permute.xlu1 %596 }
  0xc5   : > { %1375 = vmatpush3.bf16.xpose.msra.mxu0 %v656_v8 }
  0xc6   : > { %1393 = vmatprep.subr.msk.bf16.mxu0 %vm624_vm0, %v547_v9 }
  0xcd   : > { %1377 = vmatpush3.bf16.xpose.msra.mxu0 %v659_v13 }
  0xd4   : > { %1379 = vmatmul.mubr.msk.bf16.vlgmr.msra.gmra.mrb[0].mxu0 %vm624_vm0, %v1667_v48  ;;  %v567_v48 = vpop.permute.xlu0 %566 }
  0xd5   : > { %1380 = vmatprep.mubr.msk.bf16.mxu0 %vm624_vm0, %v1503_v14 }
  0xd8   : > { %v582_v36 = vpop.permute.xlu0 %581 }
  0xdc   : > { %1381 = vmatmul.mubr.msk.bf16.gmra.mrb[4].mxu0 %vm624_vm0, %v1503_v14  ;;  %v592_v54 = vpop.permute.xlu0 %591 }
  0xdd   : > { %1382 = vmatprep.mubr.msk.bf16.mxu0 %vm624_vm0, %v1504_v15 }
  0xe0   : > { %v602_v6 = vpop.permute.xlu0 %601 }
  0xe4   : > { %1383 = vmatmul.mubr.msk.bf16.gmra.mrb[8].mxu0 %vm624_vm0, %v1504_v15 }
  0xe5   : > { %1384 = vmatprep.mubr.msk.bf16.mxu0 %vm624_vm0, %v1505_v16 }
  0xec   : > { %1385 = vmatmul.mubr.msk.bf16.gmra.mrb[12].mxu0 %vm624_vm0, %v1505_v16 }
 0x1a7   : > { %v719_v17 = vpop.f32.mrb[0].mxu0 }
 0x1a8   : > { %v720_v18 = vadd.f32 %v719_v17, %v567_v48  ;;  %v721_v19 = vpop.f32.mrb[1].mxu0  ;;  %v1506_v17 = vld [vmem:[%s1896_s4] sm:$0xff]  }
 0x1a9   : > { %v722_v21 = vadd.f32 %v721_v19, %v567_v48  ;;  %v723_v22 = vpop.f32.mrb[2].mxu0  ;;  %v1508_v19 = vld [vmem:[%s1896_s4 + $0x10] sm:$0xff]  }
 0x1aa   : > { %v724_v23 = vadd.f32 %v723_v22, %v572_v20  ;;  %v725_v24 = vpop.f32.mrb[3].mxu0  ;;  %v758_v26 = vmax.f32 %v720_v18, 0.0  ;;  %v1507_v18 = vld [vmem:[%s1896_s4 + $0x8] sm:$0xff]  }
 0x1ab   : > { %v726_v25 = vadd.f32 %v725_v24, %v572_v20  ;;  %v759_v28 = vmax.f32 %v722_v21, 0.0  ;;  %v1509_v20 = vld [vmem:[%s1896_s4 + $0x18] sm:$0xff]   ;;  %v801_v21 = vpop.permute.xlu1 %800 }
 0x1ac   : > { %v760_v27 = vmax.f32 %v724_v23, 0.0 }
 0x1ad   : > { %v761_v29 = vmax.f32 %v726_v25, 0.0  ;;  %v806_v25 = vpop.permute.xlu0 %805 }
 0x1ae   : > { %v782_v30 = vpack.c.bf16 %v760_v27, %v758_v26 }
 0x1af   : > { %v729_v32 = vpop.f32.mrb[4].mxu0  ;;  %v783_v33 = vpack.c.bf16 %v761_v29, %v759_v28 }
 0x1b0   : > { %v730_v34 = vadd.f32 %v729_v32, %v577_v31  ;;  %v731_v35 = vpop.f32.mrb[5].mxu0 }
 0x1b1   : > { %v732_v37 = vadd.f32 %v731_v35, %v577_v31  ;;  %v733_v38 = vpop.f32.mrb[6].mxu0  ;;  %870 = vmatprep.subr.bf16.mxu1 %v783_v33 }
 0x1b2   : > { %v734_v39 = vadd.f32 %v733_v38, %v582_v36  ;;  %v735_v40 = vpop.f32.mrb[7].mxu0  ;;  %871 = vmatpush1.bf16.msra.mxu1 %v782_v30  ;;  %v762_v42 = vmax.f32 %v730_v34, 0.0 }
 0x1b3   : > { %v736_v41 = vadd.f32 %v735_v40, %v582_v36  ;;  %v763_v44 = vmax.f32 %v732_v37, 0.0 }
 0x1b4   : > { %v764_v43 = vmax.f32 %v734_v39, 0.0 }
 0x1b5   : > { %v765_v45 = vmax.f32 %v736_v41, 0.0  ;;  %v811_v41 = vpop.permute.xlu1 %810 }
 0x1b6   : > { %v784_v46 = vpack.c.bf16 %v764_v43, %v762_v42 }
 0x1b7   : > { %v785_v49 = vpack.c.bf16 %v765_v45, %v763_v44  ;;  %v739_v50 = vpop.f32.mrb[8].mxu0 }
 0x1b8   : > { %v740_v52 = vadd.f32 %v739_v50, %v587_v47  ;;  %v741_v53 = vpop.f32.mrb[9].mxu0 }
 0x1b9   : > { %v742_v55 = vadd.f32 %v741_v53, %v587_v47  ;;  %v743_v56 = vpop.f32.mrb[10].mxu0  ;;  %872 = vmatprep.subr.bf16.mxu1 %v785_v49 }
 0x1ba   : > { %v744_v57 = vadd.f32 %v743_v56, %v592_v54  ;;  %v745_v58 = vpop.f32.mrb[11].mxu0  ;;  %873 = vmatpush1.bf16.msra.mxu1 %v784_v46  ;;  %v766_v60 = vmax.f32 %v740_v52, 0.0  ;;  %v816_v46 = vpop.permute.xlu0 %815 }
 0x1bb   : > { %v746_v59 = vadd.f32 %v745_v58, %v592_v54  ;;  %v767_v62 = vmax.f32 %v742_v55, 0.0 }
 0x1bc   : > { %v768_v61 = vmax.f32 %v744_v57, 0.0 }
 0x1bd   : > { %v769_v63 = vmax.f32 %v746_v59, 0.0 }
 0x1be   : > { %v786_v0 = vpack.c.bf16 %v768_v61, %v766_v60 }
 0x1bf   : > { %v787_v2 = vpack.c.bf16 %v769_v63, %v767_v62  ;;  %v749_v3 = vpop.f32.mrb[12].mxu0 }
 0x1c0   : > { %v750_v4 = vadd.f32 %v749_v3, %v597_v1  ;;  %v751_v5 = vpop.f32.mrb[13].mxu0 }
 0x1c1   : > { %v752_v7 = vadd.f32 %v751_v5, %v597_v1  ;;  %v753_v8 = vpop.f32.mrb[14].mxu0  ;;  %874 = vmatprep.subr.bf16.mxu1 %v787_v2 }
 0x1c2   : > { %v754_v9 = vadd.f32 %v753_v8, %v602_v6  ;;  %v755_v10 = vpop.f32.mrb[15].mxu0  ;;  %875 = vmatpush1.bf16.msra.mxu1 %v786_v0  ;;  %v770_v12 = vmax.f32 %v750_v4, 0.0 }
 0x1c3   : > { %v756_v11 = vadd.f32 %v755_v10, %v602_v6  ;;  %v771_v14 = vmax.f32 %v752_v7, 0.0  ;;  %v821_v6 = vpop.permute.xlu1 %820 }
 0x1c4   : > { %v772_v13 = vmax.f32 %v754_v9, 0.0 }
 0x1c5   : > { %v773_v15 = vmax.f32 %v756_v11, 0.0 }
 0x1c6   : > { %v788_v16 = vpack.c.bf16 %v772_v13, %v770_v12 }
 0x1c7   : > { %v789_v48 = vpack.c.bf16 %v773_v15, %v771_v14  ;;  %v826_v14 = vpop.permute.xlu0 %825 }
 0x1c9   : > { %876 = vmatprep.subr.bf16.mxu1 %v789_v48 }
 0x1ca   : > { %877 = vmatpush1.bf16.msra.mxu1 %v788_v16 }
 0x1cd   : > { %1316 = vmatmul.mubr.msk.bf16.vlgmr.msra.gmra.mrb[0].mxu1 %vm624_vm0, %v1506_v17 }
 0x1ce   : > { %912 = vmatprep.mubr.bf16.mxu1 %v1535_v51 }
 0x1d5   : > { %1317 = vmatmul.mubr.msk.bf16.gmra.mrb[4].mxu1 %vm624_vm0, %v1507_v18 }
 0x1d6   : > { %922 = vmatprep.mubr.bf16.mxu1 %v1535_v51 }
 0x1dd   : > { %1318 = vmatmul.mubr.msk.bf16.gmra.mrb[8].mxu1 %vm624_vm0, %v1508_v19 }
 0x1de   : > { %932 = vmatprep.mubr.bf16.mxu1 %v1535_v51 }
 0x1e5   : > { %1319 = vmatmul.mubr.msk.bf16.gmra.mrb[12].mxu1 %vm624_vm0, %v1509_v20 }
 0x2a0   : > { %v904_v22 = vpop.f32.mrb[0].mxu1 }
 0x2a1   : > { %v905_v23 = vadd.f32 %v904_v22, %v801_v21  ;;  %v906_v24 = vpop.f32.mrb[1].mxu1 }
 0x2a2   : > { %v907_v26 = vadd.f32 %v906_v24, %v801_v21  ;;  %v908_v27 = vpop.f32.mrb[2].mxu1 }
 0x2a3   : > { %v1320_v28 = vadd.f32 -0.01, %v905_v23  ;;  %vm975_vm2 = vcmp.lt.f32.partialorder %v905_v23, -0.01  ;;  %v909_v29 = vadd.f32 %v908_v27, %v806_v25  ;;  %vm943_vm3 = vcmp.gt.f32.partialorder %v905_v23, 0.01 }
 0x2a4   : > { %v991_v51 = vadd.f32 0.01, %v905_v23  ;;  %v1321_v30 = vadd.f32 -0.01, %v907_v26  ;;  %vm944_vm4 = vcmp.gt.f32.partialorder %v907_v26, 0.01 }
 0x2a5   : > { %vm976_vm5 = vcmp.lt.f32.partialorder %v907_v26, -0.01  ;;  %v992_v31 = vadd.f32 0.01, %v907_v26  ;;  %v1322_v33 = vadd.f32 -0.01, %v909_v29 }
 0x2a6   : > { %v1007_v32 = vsel %vm975_vm2, %v991_v51, 0.0  ;;  %vm977_vm6 = vcmp.lt.f32.partialorder %v909_v29, -0.01  ;;  %v910_v34 = vpop.f32.mrb[3].mxu1  ;;  %v993_v37 = vadd.f32 0.01, %v909_v29 }
 0x2a7   : > { %v1023_v35 = vsel %vm943_vm3, %v1320_v28, %v1007_v32  ;;  %v1008_v36 = vsel %vm976_vm5, %v992_v31, 0.0  ;;  %v911_v38 = vadd.f32 %v910_v34, %v806_v25  ;;  %vm945_vm7 = vcmp.gt.f32.partialorder %v909_v29, 0.01  ;;  %v831_v32 = vpop.permute.xlu1 %830 }
 0x2a8   : > { %v1024_v39 = vsel %vm944_vm4, %v1321_v30, %v1008_v36  ;;  %v914_v40 = vpop.f32.mrb[4].mxu1  ;;  %v1009_v43 = vsel %vm977_vm6, %v993_v37, 0.0 }
 0x2a9   : > { %v1352_v42 = vpack.c.bf16 %v1024_v39, %v1023_v35  ;;  %v1323_v44 = vadd.f32 -0.01, %v911_v38  ;;  %v916_v45 = vpop.f32.mrb[5].mxu1  ;;  %vm978_vm8 = vcmp.lt.f32.partialorder %v911_v38, -0.01  ;;  %v915_v49 = vadd.f32 %v914_v40, %v811_v41  ;;  %v836_v40 = vpop.permute.xlu0 %835 }
 0x2aa   : > { %v994_v47 = vadd.f32 0.01, %v911_v38  ;;  %v918_v50 = vpop.f32.mrb[6].mxu1  ;;  %v1025_v52 = vsel %vm945_vm7, %v1322_v33, %v1009_v43  ;;  %vm946_vm9 = vcmp.gt.f32.partialorder %v911_v38, 0.01  ;;  %v917_v53 = vadd.f32 %v916_v45, %v811_v41 }
 0x2ab   : > { %1063 = vst [vmem:[%s1849_s24] sm:$0xff] %v1352_v42  ;;  %v919_v54 = vadd.f32 %v918_v50, %v816_v46  ;;  %v920_v55 = vpop.f32.mrb[7].mxu1  ;;  %vm947_vm10 = vcmp.gt.f32.partialorder %v915_v49, 0.01  ;;  %v1324_v57 = vadd.f32 -0.01, %v915_v49 }
 0x2ac   : > { %v1010_v56 = vsel %vm978_vm8, %v994_v47, 0.0  ;;  %vm979_vm11 = vcmp.lt.f32.partialorder %v915_v49, -0.01  ;;  %v995_v59 = vadd.f32 0.01, %v915_v49  ;;  %v921_v60 = vadd.f32 %v920_v55, %v816_v46 }
 0x2ad   : > { %v1026_v58 = vsel %vm946_vm9, %v1323_v44, %v1010_v56  ;;  %v1325_v62 = vadd.f32 -0.01, %v917_v53  ;;  %vm980_vm12 = vcmp.lt.f32.partialorder %v917_v53, -0.01  ;;  %v996_v63 = vadd.f32 0.01, %v917_v53 }
 0x2ae   : > { %v1353_v61 = vpack.c.bf16 %v1026_v58, %v1025_v52  ;;  %v1011_v0 = vsel %vm979_vm11, %v995_v59, 0.0  ;;  %vm948_vm13 = vcmp.gt.f32.partialorder %v917_v53, 0.01  ;;  %v1326_v1 = vadd.f32 -0.01, %v919_v54 }
 0x2af   : > { %v1027_v2 = vsel %vm947_vm10, %v1324_v57, %v1011_v0  ;;  %v1012_v3 = vsel %vm980_vm12, %v996_v63, 0.0  ;;  %vm981_vm14 = vcmp.lt.f32.partialorder %v919_v54, -0.01  ;;  %v997_v4 = vadd.f32 0.01, %v919_v54 }
 0x2b0   : > { %1064 = vst [vmem:[%s1849_s24 + $0x8] sm:$0xff] %v1353_v61  ;;  %v924_v5 = vpop.f32.mrb[8].mxu1  ;;  %v1028_v7 = vsel %vm948_vm13, %v1325_v62, %v1012_v3  ;;  %vm949_vm15 = vcmp.gt.f32.partialorder %v919_v54, 0.01  ;;  %v1327_v8 = vadd.f32 -0.01, %v921_v60 }
 0x2b1   : > { %vm982_vm0 = vcmp.lt.f32.partialorder %v921_v60, -0.01  ;;  %v1354_v9 = vpack.c.bf16 %v1028_v7, %v1027_v2  ;;  %v1013_v10 = vsel %vm981_vm14, %v997_v4, 0.0  ;;  %v998_v11 = vadd.f32 0.01, %v921_v60  ;;  %v926_v13 = vpop.f32.mrb[9].mxu1 }
 0x2b2   : > { %v925_v12 = vadd.f32 %v924_v5, %v821_v6  ;;  %v1029_v15 = vsel %vm949_vm15, %v1326_v1, %v1013_v10  ;;  %v927_v16 = vadd.f32 %v926_v13, %v821_v6  ;;  %v928_v48 = vpop.f32.mrb[10].mxu1  ;;  %vm950_vm1 = vcmp.gt.f32.partialorder %v921_v60, 0.01  ;;  %v1142_v6 = vld [vmem:[%s1849_s24] sm:$0xff] (%p1601_p4) }
 0x2b3   : > { %1065 = vst [vmem:[%s1849_s24 + $0x10] sm:$0xff] %v1354_v9  ;;  %v1014_v17 = vsel %vm982_vm0, %v998_v11, 0.0  ;;  %v929_v19 = vadd.f32 %v928_v48, %v826_v14  ;;  %v930_v20 = vpop.f32.mrb[11].mxu1  ;;  %1143 = vst [vmem:[%s1108_s26] sm:$0xff] (%p1601_p4), %v1142_v6 }
 0x2b4   : > { %v1328_v18 = vadd.f32 -0.01, %v925_v12  ;;  %v1030_v21 = vsel %vm950_vm1, %v1327_v8, %v1014_v17  ;;  %vm951_vm2 = vcmp.gt.f32.partialorder %v925_v12, 0.01  ;;  %vm983_vm3 = vcmp.lt.f32.partialorder %v925_v12, -0.01 }
 0x2b5   : > { %v999_v22 = vadd.f32 0.01, %v925_v12  ;;  %v1355_v23 = vpack.c.bf16 %v1030_v21, %v1029_v15  ;;  %v1329_v24 = vadd.f32 -0.01, %v927_v16  ;;  %vm984_vm4 = vcmp.lt.f32.partialorder %v927_v16, -0.01 }
 0x2b6   : > { %v1000_v25 = vadd.f32 0.01, %v927_v16  ;;  %vm952_vm5 = vcmp.gt.f32.partialorder %v927_v16, 0.01  ;;  %v1330_v27 = vadd.f32 -0.01, %v929_v19  ;;  %v931_v28 = vadd.f32 %v930_v20, %v826_v14 }
 0x2b7   : > { %v1015_v26 = vsel %vm983_vm3, %v999_v22, 0.0  ;;  %1066 = vst [vmem:[%s1849_s24 + $0x18] sm:$0xff] %v1355_v23  ;;  %vm985_vm6 = vcmp.lt.f32.partialorder %v929_v19, -0.01  ;;  %v1001_v30 = vadd.f32 0.01, %v929_v19 }
 0x2b8   : > { %v1031_v29 = vsel %vm951_vm2, %v1328_v18, %v1015_v26  ;;  %v1016_v51 = vsel %vm984_vm4, %v1000_v25, 0.0  ;;  %v934_v31 = vpop.f32.mrb[12].mxu1  ;;  %vm953_vm7 = vcmp.gt.f32.partialorder %v929_v19, 0.01  ;;  %v1331_v34 = vadd.f32 -0.01, %v931_v28 }
 0x2b9   : > { %v1032_v33 = vsel %vm952_vm5, %v1329_v24, %v1016_v51  ;;  %vm986_vm8 = vcmp.lt.f32.partialorder %v931_v28, -0.01  ;;  %v1017_v36 = vsel %vm985_vm6, %v1001_v30, 0.0  ;;  %v1002_v37 = vadd.f32 0.01, %v931_v28  ;;  %v936_v39 = vpop.f32.mrb[13].mxu1 }
 0x2ba   : > { %v1356_v35 = vpack.c.bf16 %v1032_v33, %v1031_v29  ;;  %v935_v38 = vadd.f32 %v934_v31, %v831_v32  ;;  %v1033_v41 = vsel %vm953_vm7, %v1330_v27, %v1017_v36  ;;  %v937_v42 = vadd.f32 %v936_v39, %v831_v32  ;;  %v938_v43 = vpop.f32.mrb[14].mxu1  ;;  %v1144_v7 = vld [vmem:[%s1849_s24 + $0x8] sm:$0xff] (%p1601_p4)  ;;  %v1146_v8 = vld [vmem:[%s1849_s24 + $0x10] sm:$0xff] (%p1601_p4) }
 0x2bb   : > { %vm954_vm9 = vcmp.gt.f32.partialorder %v931_v28, 0.01  ;;  %v1018_v44 = vsel %vm986_vm8, %v1002_v37, 0.0  ;;  %v939_v46 = vadd.f32 %v938_v43, %v836_v40  ;;  %v940_v47 = vpop.f32.mrb[15].mxu1  ;;  %1145 = vst [vmem:[%s1108_s26 + $0x10] sm:$0xff] (%p1601_p4), %v1144_v7  ;;  %1147 = vst [vmem:[%s1108_s26 + $0x20] sm:$0xff] (%p1601_p4), %v1146_v8 }
 0x2bc   : > { %1091 = vst [vmem:[%s1856_s22] sm:$0xff] %v1356_v35  ;;  %v1332_v45 = vadd.f32 -0.01, %v935_v38  ;;  %v1034_v49 = vsel %vm954_vm9, %v1331_v34, %v1018_v44  ;;  %vm955_vm10 = vcmp.gt.f32.partialorder %v935_v38, 0.01  ;;  %vm987_vm11 = vcmp.lt.f32.partialorder %v935_v38, -0.01 }
 0x2bd   : > { %v1003_v50 = vadd.f32 0.01, %v935_v38  ;;  %v1357_v52 = vpack.c.bf16 %v1034_v49, %v1033_v41  ;;  %v1333_v53 = vadd.f32 -0.01, %v937_v42  ;;  %vm988_vm12 = vcmp.lt.f32.partialorder %v937_v42, -0.01 }
 0x2be   : > { %v1004_v54 = vadd.f32 0.01, %v937_v42  ;;  %vm956_vm13 = vcmp.gt.f32.partialorder %v937_v42, 0.01  ;;  %v1334_v56 = vadd.f32 -0.01, %v939_v46  ;;  %v941_v57 = vadd.f32 %v940_v47, %v836_v40 }
 0x2bf   : > { %v1019_v55 = vsel %vm987_vm11, %v1003_v50, 0.0  ;;  %1092 = vst [vmem:[%s1856_s22 + $0x8] sm:$0xff] %v1357_v52  ;;  %vm989_vm14 = vcmp.lt.f32.partialorder %v939_v46, -0.01  ;;  %v1005_v60 = vadd.f32 0.01, %v939_v46 }
 0x2c0   : > { %v1035_v58 = vsel %vm955_vm10, %v1332_v45, %v1019_v55  ;;  %v1020_v59 = vsel %vm988_vm12, %v1004_v54, 0.0  ;;  %v1335_v62 = vadd.f32 -0.01, %v941_v57  ;;  %vm990_vm15 = vcmp.lt.f32.partialorder %v941_v57, -0.01  ;;  %v1148_v9 = vld [vmem:[%s1849_s24 + $0x18] sm:$0xff] (%p1601_p4) }
 0x2c1   : > { %v1036_v61 = vsel %vm956_vm13, %v1333_v53, %v1020_v59  ;;  %vm957_vm0 = vcmp.gt.f32.partialorder %v939_v46, 0.01  ;;  %v1021_v0 = vsel %vm989_vm14, %v1005_v60, 0.0  ;;  %v1006_v1 = vadd.f32 0.01, %v941_v57  ;;  %1105 = sbr.rel (!%p1601_p4) target bundleno = 712 (0x2c8), region = 48 }
 0x2c2   : > { %v1358_v63 = vpack.c.bf16 %v1036_v61, %v1035_v58  ;;  %v1037_v2 = vsel %vm957_vm0, %v1334_v56, %v1021_v0  ;;  %vm958_vm1 = vcmp.gt.f32.partialorder %v941_v57, 0.01  ;;  %1149 = vst [vmem:[%s1108_s26 + $0x30] sm:$0xff] (%p1601_p4), %v1148_v9 }
 0x2c3   : > { %v1022_v3 = vsel %vm990_vm15, %v1006_v1, 0.0 }
 0x2c4   : > { %1093 = vst [vmem:[%s1856_s22 + $0x10] sm:$0xff] %v1358_v63  ;;  %v1038_v4 = vsel %vm958_vm1, %v1335_v62, %v1022_v3 }
 0x2c5   : > { %v1359_v5 = vpack.c.bf16 %v1038_v4, %v1037_v2 }
 0x2c7   : > { %1094 = vst [vmem:[%s1856_s22 + $0x18] sm:$0xff] %v1359_v5 }
 0x2c8 PF: > { %1155 = sbr.rel (!%p1601_p4) target bundleno = 720 (0x2d0), region = 86  ;;  %s1361_s29 = sshll.u32 (%p1601_p4), %s1589_s27, 3  ;;  %v1192_v10 = vld [vmem:[%s1856_s22] sm:$0xff] (%p1601_p4)  ;;  %v1194_v11 = vld [vmem:[%s1856_s22 + $0x8] sm:$0xff] (%p1601_p4) }
 0x2c9   : > { %s1158_s13 = scalar_lea.vmem (%p1601_p4), %s1899_s7, %s1361_s29 }
 0x2ca   : > { %1193 = vst [vmem:[%s1158_s13] sm:$0xff] (%p1601_p4), %v1192_v10  ;;  %1195 = vst [vmem:[%s1158_s13 + $0x10] sm:$0xff] (%p1601_p4), %v1194_v11 }
 0x2cb   : > { %v1196_v12 = vld [vmem:[%s1856_s22 + $0x10] sm:$0xff] (%p1601_p4) }
 0x2cc   : > { %1197 = vst [vmem:[%s1158_s13 + $0x20] sm:$0xff] (%p1601_p4), %v1196_v12 }
 0x2ce   : > { %v1198_v13 = vld [vmem:[%s1856_s22 + $0x18] sm:$0xff] (%p1601_p4) }
 0x2cf   : > { %1199 = vst [vmem:[%s1158_s13 + $0x30] sm:$0xff] %v1198_v13 }
 0x2d0 PF: > { %p15_p8 = scmp.ge.s32.totalorder %s1591_s28, 4   ;;  %s1901_s24 = smov %s1528_s25 }
 0x2d1   : > { %s1902_s25 = smov %s1599_s8  ;;  %s1903_s26 = smov %s1591_s28 }
 0x2d2   :  { %17 = sbr.rel (!%p15_p8) target bundleno = 2 (0x2), region = 165 }

</bundles_post_ra>
